<compile_context>
chip_gen: v7x
topology: tpu7x:2x2x1
jax: 0.10.0
libtpu: 0.0.40
codegen_flags: <defaults>
</compile_context>

<pallas_src>
import functools

import jax
import jax.numpy as jnp
from jax import lax
from jax.experimental import pallas as pl
from jax.experimental.pallas import tpu as pltpu


def _round_up(x: int, m: int) -> int:
    return (x + m - 1) // m * m


def _vmem_limit_bytes() -> int:
    """Generation-aware VMEM budget (~75% of capacity, capped at 100 MiB)."""
    try:
        cap = int(pltpu.get_tpu_info().vmem_capacity_bytes)
    except Exception:  # noqa: BLE001 - fall back to the smallest generation (v7x)
        cap = 64 * 1024 * 1024
    return min(cap * 3 // 4, 100 * 1024 * 1024)


def _gather_vmem_bytes(tm: int, hp: int, out_bytes: int) -> int:
    return (2 * tm * hp * 4           # double-buffered f32 gather scratch
            + 2 * tm * hp * out_bytes  # double-buffered output tile
            + 2 * hp * hp * 2          # resident bf16 W (worst case: 2 buffers)
            + 2 * hp * 4)              # bias


# ----------------------------------------------------------------------------
# Path A: small vocab (V <= Hp) -- whole table resident in VMEM, one-hot gather
# ----------------------------------------------------------------------------
def _resident_kernel(ids_ref,   # VMEM [tm, 1]  int32
                     emb_ref,   # VMEM [V, Hp]  bfloat16 (resident)
                     w_ref,     # VMEM [Hp, Hp] bfloat16 (resident)
                     b_ref,     # VMEM [1, Hp]  float32  (resident)
                     o_ref):    # VMEM [tm, Hp] out
    tm = ids_ref.shape[0]
    V = emb_ref.shape[0]
    ids = ids_ref[...]                                            # (tm, 1)
    onehot = (ids == lax.broadcasted_iota(jnp.int32, (tm, V), 1)
              ).astype(jnp.bfloat16)                              # (tm, V)
    # One-hot MXU gather: each output row is exactly one bf16 embedding row.
    x = jnp.dot(onehot, emb_ref[...], preferred_element_type=jnp.float32)
    acc = jnp.dot(x.astype(jnp.bfloat16), w_ref[...],
                  preferred_element_type=jnp.float32)
    o_ref[...] = jnp.tanh(acc + b_ref[...]).astype(o_ref.dtype)


# ----------------------------------------------------------------------------
# Path B: large vocab -- table stays in HBM, pipelined per-row DMA gather
# ----------------------------------------------------------------------------
def _gather_kernel(tok_ref,   # SMEM [BSp] int32 (scalar prefetch)
                   emb_hbm,   # HBM  [V, Hp] float32 (pl.ANY, row DMAs)
                   w_ref,     # VMEM [Hp, Hp] bfloat16 (resident)
                   b_ref,     # VMEM [1, Hp]  float32  (resident)
                   o_ref,     # VMEM [tm, Hp] out
                   x_buf,     # VMEM [2*tm, Hp] float32 (double-buffered)
                   sems,      # DMA semaphores [2]
                   *, tm: int):
    i = pl.program_id(0)
    nsteps = pl.num_programs(0)

    def issue_tile(step, slot):
        # One row DMA per token of the tile; all signal sems[slot].
        base = step * tm
        dst_base = slot * tm

        def body(r, carry):
            idx = tok_ref[base + r]
            pltpu.make_async_copy(emb_hbm.at[idx], x_buf.at[dst_base + r],
                                  sems.at[slot]).start()
            return carry

        lax.fori_loop(0, tm, body, 0, unroll=min(8, tm))

    # Prime slot 0 on the very first step.
    @pl.when(i == 0)
    def _():
        issue_tile(0, 0)

    # Prefetch the next tile's rows into the other slot: these DMAs run while
    # the current tile's matmul / tanh occupy the MXU / VPU.
    @pl.when(i + 1 < nsteps)
    def _():
        issue_tile(i + 1, (i + 1) & 1)

    slot = i & 1
    start = pl.multiple_of(slot * tm, 8)
    cur = x_buf.at[pl.ds(start, tm)]
    # Single drain: one wait for the whole tile's bytes on this slot's sem.
    pltpu.make_async_copy(cur, cur, sems.at[slot]).wait()

    x_bf16 = x_buf[pl.ds(start, tm), :].astype(jnp.bfloat16)
    acc = jnp.dot(x_bf16, w_ref[...], preferred_element_type=jnp.float32)
    # TODO(synk): bf16 bias-add + tanh on v6e/v7x (bf16 EUP) once gather-bound.
    o_ref[...] = jnp.tanh(acc + b_ref[...]).astype(o_ref.dtype)


# ----------------------------------------------------------------------------
# Wrappers
# ----------------------------------------------------------------------------
def prepare_backbone_params(embedding, w_enc, b_enc):
    """Pad/cast backbone parameters ONCE, outside the per-call hot path."""
    V, H = embedding.shape
    Hp = _round_up(H, 128)
    emb32 = embedding.astype(jnp.float32)
    if Hp == H:
        emb_p = emb32                         # no re-pad copy of the table
    else:
        emb_p = jnp.zeros((V, Hp), jnp.float32).at[:, :H].set(emb32)
    w_p = jnp.zeros((Hp, Hp), jnp.bfloat16).at[:H, :H].set(
        w_enc.astype(jnp.bfloat16))
    b_p = jnp.zeros((1, Hp), jnp.float32).at[:, :H].set(
        b_enc.astype(jnp.float32))
    return emb_p, w_p, b_p


def backbone_forward(token_ids, emb_p, w_p, b_p, *, hidden_size=None,
                     out_dtype=jnp.float32, tm=None, force_hbm_gather=False):
    """ModelBackbone.forward: embed tokens, encode with a dense tanh layer.

    token_ids: [B, S] int32
    emb_p:     [V, Hp] float32   (from prepare_backbone_params)
    w_p:       [Hp, Hp] bfloat16
    b_p:       [1, Hp] float32
    returns:   [B, S, H] out_dtype
    """
    B, S = token_ids.shape
    V, Hp = emb_p.shape
    H = Hp if hidden_size is None else hidden_size
    BS = B * S
    out_bytes = jnp.dtype(out_dtype).itemsize
    vmem_limit = _vmem_limit_bytes()

    # Row-tile selection.
    if tm is None:
        tm = min(512, _round_up(BS, 8))
    tm = max(8, _round_up(tm, 8))
    # v7x has 2 TensorCores / the pipeline needs >=2 steps to overlap anything.
    if _round_up(BS, tm) // tm < 2 and tm > 8:
        tm = max(8, _round_up(tm // 2, 8))
    # Shrink tm until the double-buffered scratch fits this chip's VMEM budget.
    while tm > 8 and _gather_vmem_bytes(tm, Hp, out_bytes) > int(0.8 * vmem_limit):
        tm = max(8, _round_up(tm // 2, 8))
    BSp = _round_up(BS, tm)
    grid_rows = BSp // tm

    # Clamp ids (an id >= V would otherwise issue an OOB HBM DMA -> chip fault)
    # and pad the flattened id vector (padded rows gather row 0, then sliced).
    ids = jnp.clip(token_ids.reshape(BS).astype(jnp.int32), 0, V - 1)
    ids = jnp.zeros((BSp,), jnp.int32).at[:BS].set(ids)

    use_resident = (V <= Hp) and not force_hbm_gather

    if use_resident:
        # Whole table resident in VMEM; one-hot MXU gather (V <= Hp keeps the
        # gather matmul no more expensive than the encoder matmul).
        emb_vmem = emb_p.astype(jnp.bfloat16)   # small cast: V <= Hp rows
        out = pl.pallas_call(
            _resident_kernel,
            out_shape=jax.ShapeDtypeStruct((BSp, Hp), out_dtype),
            grid_spec=pltpu.PrefetchScalarGridSpec(
                num_scalar_prefetch=0,
                grid=(grid_rows,),
                in_specs=[
                    pl.BlockSpec((tm, 1), lambda i: (i, 0)),     # token ids
                    pl.BlockSpec((V, Hp), lambda i: (0, 0)),     # resident table
                    pl.BlockSpec((Hp, Hp), lambda i: (0, 0)),    # resident W
                    pl.BlockSpec((1, Hp), lambda i: (0, 0)),     # resident bias
                ],
                out_specs=pl.BlockSpec((tm, Hp), lambda i: (i, 0)),
            ),
            compiler_params=pltpu.CompilerParams(
                dimension_semantics=("parallel",),   # no cross-step state
                vmem_limit_bytes=vmem_limit,
            ),
            cost_estimate=pl.CostEstimate(
                flops=2 * BSp * Hp * (V + Hp),
                transcendentals=BSp * Hp,
                bytes_accessed=(BSp * 4 + V * Hp * 2 + Hp * Hp * 2 + Hp * 4
                                + BSp * Hp * out_bytes),
            ),
        )(ids.reshape(BSp, 1), emb_vmem, w_p, b_p)
    else:
        out = pl.pallas_call(
            functools.partial(_gather_kernel, tm=tm),
            out_shape=jax.ShapeDtypeStruct((BSp, Hp), out_dtype),
            grid_spec=pltpu.PrefetchScalarGridSpec(
                num_scalar_prefetch=1,
                grid=(grid_rows,),
                in_specs=[
                    pl.BlockSpec(memory_space=pl.ANY),             # table (HBM)
                    pl.BlockSpec((Hp, Hp), lambda i, tok: (0, 0)),  # resident W
                    pl.BlockSpec((1, Hp), lambda i, tok: (0, 0)),   # resident b
                ],
                out_specs=pl.BlockSpec((tm, Hp), lambda i, tok: (i, 0)),
                scratch_shapes=[
                    pltpu.VMEM((2 * tm, Hp), jnp.float32),  # 2-slot gather buf
                    pltpu.SemaphoreType.DMA((2,)),          # per-slot sems
                ],
            ),
            compiler_params=pltpu.CompilerParams(
                # Cross-step DMA pipeline state (next-tile prefetch) -> the row
                # axis must stay "arbitrary" (a megacore split would deadlock
                # the unprimed core).
                dimension_semantics=("arbitrary",),
                vmem_limit_bytes=vmem_limit,
            ),
            cost_estimate=pl.CostEstimate(
                flops=2 * BSp * Hp * Hp,
                transcendentals=BSp * Hp,
                bytes_accessed=(BSp * Hp * 4 + Hp * Hp * 2 + Hp * 4
                                + BSp * Hp * out_bytes),
            ),
        )(ids, emb_p, w_p, b_p)

    return out[:BS, :H].reshape(B, S, H)


if __name__ == "__main__":
    # Small shapes consistent with a text backbone.
    B, S, V, H = 2, 8, 64, 32

    key = jax.random.PRNGKey(0)
    k_tok, k_emb, k_w, k_b = jax.random.split(key, 4)

    token_ids = jax.random.randint(k_tok, (B, S), 0, V, dtype=jnp.int32)
    embedding = jax.random.normal(k_emb, (V, H), dtype=jnp.float32) * 0.1
    w_enc = jax.random.normal(k_w, (H, H), dtype=jnp.float32) * 0.1
    b_enc = jax.random.normal(k_b, (1, H), dtype=jnp.float32) * 0.1

    # Pad / cast parameters once, outside the hot path.
    emb_p, w_p, b_p = prepare_backbone_params(embedding, w_enc, b_enc)

    # Exercise both paths: VMEM-resident small-vocab fast path and the
    # pipelined HBM row-DMA gather path.
    out_resident = backbone_forward(token_ids, emb_p, w_p, b_p, hidden_size=H)
    out_gather = backbone_forward(token_ids, emb_p, w_p, b_p, hidden_size=H,
                                  force_hbm_gather=True)
    out_resident, out_gather = jax.block_until_ready((out_resident, out_gather))

    # Reference mirrors the kernel's bf16 MXU inputs with f32 accumulation.
    xg = jnp.take(embedding, token_ids, axis=0)
    ref = jnp.tanh(
        xg.astype(jnp.bfloat16).astype(jnp.float32)
        @ w_enc.astype(jnp.bfloat16).astype(jnp.float32)
        + b_enc[0]
    )

    assert out_resident.shape == (B, S, H)
    assert out_gather.shape == (B, S, H)
    assert jnp.allclose(out_resident, ref, atol=2e-3, rtol=2e-3), float(
        jnp.max(jnp.abs(out_resident - ref)))
    assert jnp.allclose(out_gather, ref, atol=2e-3, rtol=2e-3), float(
        jnp.max(jnp.abs(out_gather - ref)))

    print("KERNEL_OK")
</pallas_src>

<mosaic_0001>
module attributes {stable_mosaic.version = 11 : i64} {
  func.func @_resident_kernel(%arg0: i32, %arg1: memref<8x1xi32, #tpu.memory_space<vmem>>, %arg2: memref<64x128xbf16, #tpu.memory_space<vmem>>, %arg3: memref<128x128xbf16, #tpu.memory_space<vmem>>, %arg4: memref<1x128xf32, #tpu.memory_space<vmem>>, %arg5: memref<8x128xf32, #tpu.memory_space<vmem>>) attributes {dimension_semantics = [#tpu.dimension_semantics<parallel>], iteration_bounds = array<i64: 2>, scalar_prefetch = 0 : i64, scratch_operands = 0 : i64, tpu.core_type = #tpu.core_type<tc>, window_params = [{transform_indices = @transform_0, window_bounds = array<i64: 8, 1>}, {pipeline_mode = #tpu.pipeline_mode<synchronous>, transform_indices = @transform_1, window_bounds = array<i64: 64, 128>}, {pipeline_mode = #tpu.pipeline_mode<synchronous>, transform_indices = @transform_2, window_bounds = array<i64: 128, 128>}, {pipeline_mode = #tpu.pipeline_mode<synchronous>, transform_indices = @transform_3, window_bounds = array<i64: 1, 128>}, {transform_indices = @transform_4, window_bounds = array<i64: 8, 128>}]} {
    %c0 = arith.constant 0 : index
    %c0_0 = arith.constant 0 : index
    %0 = vector.load %arg1[%c0, %c0_0] : memref<8x1xi32, #tpu.memory_space<vmem>>, vector<8x1xi32>
    %1 = tpu.iota {dimensions = array<i32: 1>} : vector<8x64xi32>
    %2 = vector.broadcast %0 : vector<8x1xi32> to vector<8x64xi32>
    %3 = arith.cmpi eq, %2, %1 : vector<8x64xi32>
    %4 = arith.extui %3 : vector<8x64xi1> to vector<8x64xi32>
    %5 = arith.sitofp %4 : vector<8x64xi32> to vector<8x64xf32>
    %6 = arith.truncf %5 : vector<8x64xf32> to vector<8x64xbf16>
    %c0_1 = arith.constant 0 : index
    %c0_2 = arith.constant 0 : index
    %7 = vector.load %arg2[%c0_1, %c0_2] : memref<64x128xbf16, #tpu.memory_space<vmem>>, vector<64x128xbf16>
    %cst = arith.constant dense<0.000000e+00> : vector<8x128xf32>
    %8 = tpu.matmul %6, %7, %cst {dimension_numbers = #tpu.dot_dimension_numbers<[1], [0], [0], [1], [0, 0, 1, 1], [], []>} : vector<8x64xbf16>, vector<64x128xbf16>, vector<8x128xf32> -> vector<8x128xf32>
    %9 = arith.truncf %8 : vector<8x128xf32> to vector<8x128xbf16>
    %c0_3 = arith.constant 0 : index
    %c0_4 = arith.constant 0 : index
    %10 = vector.load %arg3[%c0_3, %c0_4] : memref<128x128xbf16, #tpu.memory_space<vmem>>, vector<128x128xbf16>
    %cst_5 = arith.constant dense<0.000000e+00> : vector<8x128xf32>
    %11 = tpu.matmul %9, %10, %cst_5 {dimension_numbers = #tpu.dot_dimension_numbers<[1], [0], [0], [1], [0, 0, 1, 1], [], []>} : vector<8x128xbf16>, vector<128x128xbf16>, vector<8x128xf32> -> vector<8x128xf32>
    %c0_6 = arith.constant 0 : index
    %c0_7 = arith.constant 0 : index
    %12 = vector.load %arg4[%c0_6, %c0_7] : memref<1x128xf32, #tpu.memory_space<vmem>>, vector<1x128xf32>
    %13 = vector.broadcast %12 : vector<1x128xf32> to vector<8x128xf32>
    %14 = arith.addf %11, %13 : vector<8x128xf32>
    %15 = math.tanh %14 : vector<8x128xf32>
    %c0_8 = arith.constant 0 : index
    %c0_9 = arith.constant 0 : index
    %16 = vector.load %arg5[%c0_8, %c0_9] : memref<8x128xf32, #tpu.memory_space<vmem>>, vector<8x128xf32>
    tpu.vector_store %arg5[%c0_8, %c0_9], %15 {strides = array<i32>} : memref<8x128xf32, #tpu.memory_space<vmem>>, vector<8x128xf32>,
    return
  }
  func.func @transform_0(%arg0: i32) -> (i32, i32) {
    %c0_i32 = arith.constant 0 : i32
    %c0_i32_0 = arith.constant 0 : i32
    return %arg0, %c0_i32 : i32, i32
  }
  func.func @transform_1(%arg0: i32) -> (i32, i32) {
    %c0_i32 = arith.constant 0 : i32
    %c0_i32_0 = arith.constant 0 : i32
    %c0_i32_1 = arith.constant 0 : i32
    return %c0_i32, %c0_i32_0 : i32, i32
  }
  func.func @transform_2(%arg0: i32) -> (i32, i32) {
    %c0_i32 = arith.constant 0 : i32
    %c0_i32_0 = arith.constant 0 : i32
    %c0_i32_1 = arith.constant 0 : i32
    return %c0_i32, %c0_i32_0 : i32, i32
  }
  func.func @transform_3(%arg0: i32) -> (i32, i32) {
    %c0_i32 = arith.constant 0 : i32
    %c0_i32_0 = arith.constant 0 : i32
    %c0_i32_1 = arith.constant 0 : i32
    return %c0_i32, %c0_i32_0 : i32, i32
  }
  func.func @transform_4(%arg0: i32) -> (i32, i32) {
    %c0_i32 = arith.constant 0 : i32
    %c0_i32_0 = arith.constant 0 : i32
    return %arg0, %c0_i32 : i32, i32
  }
}

</mosaic_0001>

<bundles_post_ra>
// kernel: tpu_custom_call.1
= control target key start
LH: loop header
LB: loop body
LE: loop exit
PB: predicated region body
PF: predicated region fallthrough
CT: control target
= control target key end

     0   :  { %9 = vsyncpa [#allocation3], 0  ;;  %s1010_s0 = inlined_call_operand.vmem [shape: s32[16,1], index: 0, kind: input, shape index: {}]   ;;  %s1011_s1 = inlined_call_operand.hbm [shape: bf16[64,128], index: 1, kind: input, shape index: {}]   ;;  %s1012_s2 = inlined_call_operand.hbm [shape: bf16[128,128], index: 2, kind: input, shape index: {}]   ;;  %s1013_s3 = inlined_call_operand.vmem [shape: f32[1,128], index: 3, kind: input, shape index: {}]   ;;  %s1014_s4 = inlined_call_operand.hbm [shape: f32[16,128], index: 4, kind: output, shape index: {}]  }
   0x1   :  { %10 = vsyncpa [#allocation6], 0 }
   0x2   :  { %11 = vsyncpa [#allocation4], 0 }
   0x3   :  { %13 = vsyncpa [#allocation4 + $0x1], 0  ;;  %s835_s15 = smov 0   ;;  %s837_s16 = smov 0  }
   0x4   :  { %s839_s17 = smov 0   ;;  %s841_s18 = smov 0  }
   0x5 LB: > { %s856_s19 = sadd.s32 4294967295, %s800_s18   ;;  %s519_s20 = sadd.s32 4294967294, %s800_s18   ;;  %s800_s18 = sphi %s841_s18, %s1032_s18   ;;  %s796_s17 = sphi %s839_s17, %s1031_s17   ;;  %s792_s16 = sphi %s837_s16, %s1030_s16   ;;  %s788_s15 = sphi %s835_s15, %s1029_s15  }
   0x6   : > { %s860_s21 = sadd.s32 1, %s800_s18   ;;  %s115_s22 = sadd.s32 1, %s796_s17 }
   0x7   : > { %s112_s23 = ssub.s32 %s800_s18, %s860_s21  ;;  %p125_p0 = scmp.ne.s32.totalorder %s796_s17, %s792_s16 }
   0x8   : > { %p113_p1 = scmp.eq.s32.totalorder %s112_s23, 0  ;;  %p126_p2 = scmp.eq.s32.totalorder %s856_s19, 1 }
   0x9   : > { %p131_p3 = scmp.ne.s32.totalorder %s792_s16, %s788_s15  ;;  %p132_p4 = scmp.eq.s32.totalorder %s519_s20, 1 }
   0xa   : > { %s871_s24 = scalar_select %p113_p1, %s796_s17, %s115_s22  }
   0xb   : > { %p873_p5 = por %p126_p2, %p125_p0  ;;  %p877_p6 = por %p132_p4, %p131_p3 }
   0xc   : > { %p520_p7 = scmp.ge.s32.totalorder %s800_s18, 1  ;;  %p139_p8 = scmp.lt.s32.totalorder %s800_s18, 3 }
   0xd   : > { %s1018_s25 = scalar_select %p873_p5, 1, 0 }
   0xe   : > { %s1019_s26 = scalar_select %p877_p6, 1, 0 }
   0xf   : > { %p1015_p9 = scmp.eq.s32.totalorder %s856_s19, 0  ;;  %p884_p10 = pnand %p520_p7, %p139_p8 }
  0x10   : > { %s802_s28 = smov [#allocation2]   ;;  %s803_s5 = smov [#allocation5]  }
  0x11   : > { %s1020_s27 = scalar_select %p884_p10, 1, 0 }
  0x12   : > { %s151_s29 = sshll.u32 %s802_s28, 4  ;;  %p604_p11 = pneg %p884_p10  ;;  %s152_s29 = int_to_ptr.vmem [resolvable:$true] %s151_s29 }
  0x13   : > { %s164_s6 = sshll.u32 %s803_s5, 4  ;;  %s674_s9 = scalar_lea.hbm %s1011_s1, 512  ;;  %s896_s6 = int_to_ptr.vmem [resolvable:$true] %s164_s6 }
  0x14   : > { %p892_p12 = pnand %p1015_p9, %p604_p11  ;;  %p675_p13 = scmp.ne.s32.totalorder %s1011_s1, %s674_s9 }
  0x15   : > { %p681_p3 = scmp.lt.u32.totalorder %s674_s9, %s1011_s1 }
  0x16   : > { %p676_p0 = pneg %p892_p12 }
  0x18   : > { %p677_p1 = pnand %p676_p0, %p675_p13 }
  0x1a   : > { %p678_p2 = pneg %p677_p1 }
  0x1c   : > { %p683_p4 = pnand %p681_p3, %p678_p2 }
  0x1e   : > { %686 = shalt.err (!%p683_p4)
}
  0x1f   : > { %s687_s14 = scalar_lea.vmem %s152_s29, 512  ;;  %p695_p9 = scmp.lt.s32.totalorder %s152_s29, %s152_s29 }
  0x20   : > { %p688_p7 = scmp.ne.s32.totalorder %s152_s29, %s687_s14  ;;  %p696_p6 = scmp.lt.s32.totalorder %s687_s14, %s687_s14 }
  0x22   : > { %p690_p8 = pnand %p688_p7, %p676_p0  ;;  %p697_p5 = por %p696_p6, %p695_p9 }
  0x24   : > { %p691_p11 = pneg %p690_p8 }
  0x26   : > { %p698_p10 = pnand %p697_p5, %p691_p11 }
  0x28   : > { %701 = shalt.err (!%p698_p10)
}
  0x29   : > { %s804_s20 = smov 64   ;;  %s805_s22 = smov 4  }
  0x2a   : > { %607 = dma.hbm_to_vmem [thread:$0]  (!%p892_p12), %s1011_s1, 512, %s152_s29, [#allocation3], %s804_s20, %s804_s20, %s805_s22  }
  0x2b   : > { %s702_s8 = scalar_lea.hbm %s1012_s2, 1024 }
  0x2c   : > { %p703_p13 = scmp.ne.s32.totalorder %s1012_s2, %s702_s8  ;;  %p709_p9 = scmp.lt.u32.totalorder %s702_s8, %s1012_s2 }
  0x2e   : > { %p705_p5 = pnand %p703_p13, %p676_p0 }
  0x30   : > { %p706_p6 = pneg %p705_p5 }
  0x32   : > { %p711_p10 = pnand %p709_p9, %p706_p6 }
  0x34   : > { %714 = shalt.err (!%p711_p10)
}
  0x35   : > { %s715_s29 = scalar_lea.vmem %s896_s6, 1024  ;;  %p723_p4 = scmp.lt.s32.totalorder %s896_s6, %s896_s6 }
  0x36   : > { %p716_p1 = scmp.ne.s32.totalorder %s896_s6, %s715_s29  ;;  %p724_p7 = scmp.lt.s32.totalorder %s715_s29, %s715_s29 }
  0x38   : > { %p718_p2 = pnand %p716_p1, %p676_p0  ;;  %p725_p8 = por %p724_p7, %p723_p4 }
  0x3a   : > { %p719_p3 = pneg %p718_p2 }
  0x3c   : > { %p726_p11 = pnand %p725_p8, %p719_p3 }
  0x3e   : > { %729 = shalt.err (!%p726_p11)
}
  0x3f   : > { %610 = dma.hbm_to_vmem [thread:$0]  (!%p892_p12), %s1012_s2, 1024, %s896_s6, [#allocation6], %s804_s20, %s804_s20, %s805_s22  }
  0x40   : > { %p1022_p13 = scmp.ne.s32.totalorder %s1020_s27, 0 }
  0x41   : > { %p1023_p5 = scmp.eq.s32.totalorder (!%p1022_p13), %s856_s19, 0 }
  0x42   : > { %190 = sbr.rel (%p1022_p13) target bundleno = 670 (0x29e), region = 36 }
  0x49   : > { %775 = dma.done.wait (%p1023_p5), [#allocation3], 512   ;;  %p1024_p0 = pmov %p1023_p5 }
  0x4b   : > { %777 = vsyncadd (%p1024_p0), [#allocation3], 4294966784  ;;  %p1025_p6 = pmov %p1024_p0 }
  0x4c   : > { %p1026_p9 = pmov %p1024_p0 }
  0x4d   : > { %779 = dma.done.wait (%p1025_p6), [#allocation6], 1024  }
  0x4e   : > { %781 = vsyncadd (%p1026_p9), [#allocation6], 4294966272  ;;  %p219_p10 = scmp.lt.s32.totalorder %s856_s19, 1  ;;  %v806_v0 = vmov 0   ;;  %v807_v1 = vmov 0.0   ;;  %v660_v3 = vld [vmem:[#allocation2] sm:$0xff]   ;;  %v225_v14 = vlaneseq }
  0x4f   : > { %659 = vset.pattern.permute.xlu0 %v806_v0  ;;  %562 = vmatprep.subr.bf16.mxu0 %v807_v1  ;;  %v661_v4 = vld [vmem:[#allocation2 + $0x8] sm:$0xff]   ;;  %vm808_vm0 = vmmov 0   ;;  %v664_v5 = vld [vmem:[#allocation5] sm:$0xff]   ;;  %v662_v6 = vld [vmem:[#allocation2 + $0x10] sm:$0xff]   ;;  %vm266_vm2 = vcmask 523264   ;;  %s216_s5 = sand.u32 1, %s792_s16  }
  0x50   : > { %s220_s27 = scalar_select %p219_p10, %s856_s19, 1  ;;  %574 = vmatprep.subr.bf16.mxu1 %v807_v1  ;;  %563 = vmatpush3.bf16.msra.mxu0 %v660_v3  ;;  %v665_v7 = vld [vmem:[#allocation5 + $0x8] sm:$0xff]   ;;  %v663_v8 = vld [vmem:[#allocation2 + $0x18] sm:$0xff]   ;;  %v666_v9 = vld [vmem:[#allocation5 + $0x10] sm:$0xff]   ;;  %v226_v15 = vand.u32 127, %v225_v14 }
  0x51   : > { %564 = vmatprep.subr.bf16.mxu0 %v807_v1  ;;  %570 = vmatprep.mubr.msk.bf16.mxu0 %vm808_vm0, %v807_v1  ;;  %v667_v10 = vld [vmem:[#allocation5 + $0x18] sm:$0xff]   ;;  %v668_v11 = vld [vmem:[#allocation5 + $0x20] sm:$0xff]   ;;  %v669_v12 = vld [vmem:[#allocation5 + $0x28] sm:$0xff]   ;;  %s527_s7 = sshll.u32 %s216_s5, 3  ;;  %s545_s8 = sshll.u32 %s856_s19, 7 }
  0x52   : > { %s528_s30 = sshll.u32 %s220_s27, 3  ;;  %590 = vmatprep.mubr.msk.bf16.mxu1 %vm808_vm0, %v807_v1  ;;  %575 = vmatpush3.bf16.msra.mxu1 %v664_v5  ;;  %v670_v13 = vld [vmem:[#allocation5 + $0x30] sm:$0xff]   ;;  %v671_v19 = vld [vmem:[#allocation5 + $0x38] sm:$0xff]   ;;  %v535_v25 = vld [vmem:[%s1013_s3] ss:$0 sm:$0xff]  ;;  %s218_s9 = scalar_lea.vmem [#allocation7], %s527_s7 }
  0x53   : > { %s222_s22 = scalar_lea.vmem %s1010_s0, %s528_s30  ;;  %576 = vmatprep.subr.bf16.mxu1 %v807_v1  ;;  %s438_s10 = sshll.u32 %s218_s9, 4  ;;  %s970_s10 = int_to_ptr.vmem [resolvable:$true] %s438_s10 }
  0x54   : > { %v224_v2 = vld [vmem:[%s222_s22] sm:$0xff]  ;;  %565 = vmatpush3.bf16.msra.mxu0 %v661_v4  ;;  %s968_s29 = scalar_lea.hbm %s1014_s4, %s545_s8  ;;  %s425_s13 = scalar_lea.sflag [#allocation4], %s216_s5 }
  0x55   : > { %228 = vperm.xlu0 %659, %v224_v2   ;;  %566 = vmatprep.subr.bf16.mxu0 %v807_v1  ;;  %s730_s14 = scalar_lea.vmem %s970_s10, 128  ;;  %p1027_p1 = scmp.ne.s32.totalorder %s1018_s25, 0 }
  0x56   : > { %577 = vmatpush3.bf16.msra.mxu1 %v665_v7  ;;  %p731_p12 = scmp.ne.s32.totalorder %s970_s10, %s730_s14  ;;  %s809_s19 = smov [#allocation7]  }
  0x57   : > { %578 = vmatprep.subr.bf16.mxu1 %v807_v1  ;;  %s734_s27 = sshll.u32 %s809_s19, 4  ;;  %s735_s27 = int_to_ptr.vmem [resolvable:$false] %s734_s27 }
  0x58   : > { %567 = vmatpush3.bf16.msra.mxu0 %v662_v6  ;;  %p732_p2 = pnand %p731_p12, %p1027_p1  ;;  %s736_s30 = scalar_lea.vmem %s735_s27, 256 }
  0x59   : > { %568 = vmatprep.subr.bf16.mxu0 %v807_v1  ;;  %p737_p4 = scmp.lt.s32.totalorder %s970_s10, %s735_s27  ;;  %p738_p7 = scmp.lt.s32.totalorder %s736_s30, %s730_s14 }
  0x5a   : > { %579 = vmatpush3.bf16.msra.mxu1 %v666_v9  ;;  %p733_p3 = pneg %p732_p2 }
  0x5b   : > { %580 = vmatprep.subr.bf16.mxu1 %v807_v1  ;;  %p739_p8 = por %p738_p7, %p737_p4 }
  0x5c   : > { %569 = vmatpush3.bf16.msra.mxu0 %v663_v8 }
  0x5d   : > { %p740_p11 = pnand %p739_p8, %p733_p3 }
  0x5e   : > { %581 = vmatpush3.bf16.msra.mxu1 %v667_v10 }
  0x5f   : > { %582 = vmatprep.subr.bf16.mxu1 %v807_v1 }
  0x62   : > { %583 = vmatpush3.bf16.msra.mxu1 %v668_v11 }
  0x63   : > { %584 = vmatprep.subr.bf16.mxu1 %v807_v1 }
  0x66   : > { %585 = vmatpush3.bf16.msra.mxu1 %v669_v12 }
  0x67   : > { %586 = vmatprep.subr.bf16.mxu1 %v807_v1 }
  0x6a   : > { %587 = vmatpush3.bf16.msra.mxu1 %v670_v13 }
  0x6b   : > { %588 = vmatprep.subr.bf16.mxu1 %v807_v1 }
  0x6e   : > { %589 = vmatpush3.bf16.msra.mxu1 %v671_v19 }
  0xd4   : > { %v229_v16 = vpop.permute.xlu0 %228 }
  0xd5   : > { %vm230_vm1 = vcmp.eq.s32.totalorder %v229_v16, %v226_v15 }
  0xd6   : > { %v529_v17 = vsel %vm230_vm1, 1.0, %v807_v1 }
  0xd7   : > { %v233_v18 = vpack.c.bf16 %v529_v17, %v529_v17 }
  0xd9   : > { %571 = vmatmul.mubr.msk.bf16.vlgmr.msra.gmra.mrb[0].mxu0 %vm266_vm2, %v233_v18 }
 0x1ac   : > { %v304_v20 = vpop.f32.mrb[0].mxu0 }
 0x1ad   : > { %v310_v21 = vpack.c.bf16 %v304_v20, %v304_v20  ;;  %v572_v22 = vpop.f32.mrb[1].mxu0 }
 0x1ae   : > { %v307_v23 = vpop.f32.mrb[2].mxu0 }
 0x1af   : > { %v573_v24 = vpop.f32.mrb[3].mxu0  ;;  %591 = vmatmul.mubr.bf16.vlgmr.msra.gmra.mrb[0].mxu1 %v310_v21 }
 0x282   : > { %v416_v26 = vpop.f32.mrb[0].mxu1 }
 0x283   : > { %v417_v27 = vadd.f32 %v535_v25, %v416_v26  ;;  %v592_v28 = vpop.f32.mrb[1].mxu1 }
 0x284   : > { %v419_v29 = vpop.f32.mrb[2].mxu1 }
 0x285   : > { %672 = vtanh.f32 %v417_v27  ;;  %v593_v30 = vpop.f32.mrb[3].mxu1 }
 0x28f   : > { %v673_v31 = vpop.eup %672 }
 0x290   : > { %423 = vst [vmem:[%s218_s9] sm:$0xff] %v673_v31 }
 0x291   : > { %743 = shalt.err (!%p740_p11)
}
 0x292   : > { %s744_s6 = scalar_lea.hbm %s968_s29, 128  ;;  %s748_s23 = scalar_lea.hbm %s1014_s4, 256 }
 0x293   : > { %p745_p13 = scmp.ne.s32.totalorder %s968_s29, %s744_s6  ;;  %p749_p6 = scmp.lt.u32.totalorder %s968_s29, %s1014_s4 }
 0x294   : > { %p750_p9 = scmp.lt.u32.totalorder %s748_s23, %s744_s6  ;;  %p752_p12 = scmp.lt.u32.totalorder %s744_s6, %s968_s29 }
 0x295   : > { %p746_p5 = pnand %p745_p13, %p1027_p1 }
 0x296   : > { %p751_p10 = por %p750_p9, %p749_p6 }
 0x297   : > { %p747_p0 = pneg %p746_p5 }
 0x298   : > { %p753_p2 = por %p752_p12, %p751_p10 }
 0x29a   : > { %p754_p3 = pnand %p753_p2, %p747_p0 }
 0x29c   : > { %757 = shalt.err (!%p754_p3)
}
 0x29d   : > { %602 = dma.vmem_to_hbm [thread:$0]  (%p1027_p1), %s970_s10, 128, %s968_s29, %s425_s13  }
 0x29e PF: > { %p619_p4 = scmp.ge.s32.totalorder %s800_s18, 2  ;;  %s450_s7 = sand.u32 1, %s788_s15  }
 0x29f   : > { %p1028_p7 = scmp.ne.s32.totalorder %s1019_s26, 0  ;;  %s451_s8 = scalar_lea.sflag [#allocation4], %s450_s7 }
 0x2a1   : > { %p612_p8 = pnand %p619_p4, %p1028_p7 }
 0x2a3   : > { %783 = dma.done.wait (!%p612_p8), %s451_s8, 128  }
 0x2a4   : > { %785 = vsyncadd (!%p612_p8), %s451_s8, 4294967168  ;;  %p16_p11 = scmp.ge.s32.totalorder %s860_s21, 4   ;;  %s1029_s15 = smov %s792_s16 }
 0x2a5   : > { %s1030_s16 = smov %s796_s17  ;;  %s1031_s17 = smov %s871_s24 }
 0x2a6   : > { %s1032_s18 = smov %s860_s21  ;;  %18 = sbr.rel (!%p16_p11) target bundleno = 5 (0x5), region = 80 }
 0x2ad   :  { %456 = vsyncpa [#allocation3], 1 }
 0x2ae   :  { %458 = vsyncpa [#allocation3 + $0x1], 1 }
 0x2af   :  { %459 = vsyncpa [#allocation6], 1 }
 0x2b0   :  { %460 = vsyncpa [#allocation4], 1 }
 0x2b1   :  { %462 = vsyncpa [#allocation4 + $0x1], 1 }

</bundles_post_ra>
